<compile_context>
chip_gen: v7x
topology: tpu7x:2x2x1
jax: 0.10.0
libtpu: 0.0.40
codegen_flags: <defaults>
</compile_context>

<pallas_src>
import jax
import jax.numpy as jnp
import numpy as np
from jax.experimental import pallas as pl
from jax.experimental.pallas import tpu as pltpu


# ---------------------------------------------------------------------------
# Kernel: pure store of zeros into the currently selected output tile.
# ---------------------------------------------------------------------------
def _scatter_zero_kernel(idx_ref, x_ref, o_ref):
    # idx_ref: (n_masked,) int32 in SMEM -- consumed only by the index_maps.
    # x_ref:   raw HBM ref of the aliased input (memory_space=pl.ANY) -- never read.
    # o_ref:   VMEM block of the output -- filled with zeros (write-only kernel).
    del idx_ref, x_ref
    o_ref[...] = jnp.zeros(o_ref.shape, o_ref.dtype)


# ---------------------------------------------------------------------------
# Tiling helpers.
# ---------------------------------------------------------------------------
def _sublane_multiple(dtype):
    """Native sublane packing: 8 rows for 4-byte, 16 for 2-byte, 32 for 1-byte dtypes."""
    return {4: 8, 2: 16, 1: 32}.get(jnp.dtype(dtype).itemsize, 8)


def _pick_sublane_tile(rows, mult, cap=4096):
    """Largest legal sublane tile: the full extent (always legal) or a
    multiple-of-`mult` divisor of `rows` that is <= cap."""
    if rows <= cap:
        return rows
    s = cap - cap % mult
    while s >= mult:
        if rows % s == 0:
            return s
        s -= mult
    return rows  # no aligned divisor: take the whole extent (legal, just a big block)


def _pick_lane_width(hw):
    """Widest lane tile: largest multiple of 128 (<= 1024) dividing H*W."""
    for cand in (1024, 512, 256, 128):
        if hw % cand == 0:
            return cand
    return 128


# ---------------------------------------------------------------------------
# Fast path: H*W is a multiple of 128 -> lane-dense (S, L) tiles per channel.
# ---------------------------------------------------------------------------
def _zero_mask_scatter_lanes(x, idx):
    N, C, H, W = x.shape
    HW = H * W
    L = _pick_lane_width(HW)                 # lane width (multiple of 128)
    R = HW // L                              # rows of L lanes per channel
    S = _pick_sublane_tile(R, _sublane_multiple(x.dtype))
    n_hw = R // S
    n_masked = idx.shape[0]

    x3 = x.reshape(N * C, R, L)              # contiguous -> bitcast reshape

    def out_map(n, c, r, idx_ref):
        # One (1, S, L) tile of masked channel idx_ref[c] in batch element n.
        return (n * C + idx_ref[c], r, 0)

    out = pl.pallas_call(
        _scatter_zero_kernel,
        out_shape=jax.ShapeDtypeStruct((N * C, R, L), x.dtype),
        grid_spec=pltpu.PrefetchScalarGridSpec(
            num_scalar_prefetch=1,                       # idx -> SMEM
            grid=(N, n_masked, n_hw),                    # HW innermost: streaming writes
            in_specs=[pl.BlockSpec(memory_space=pl.ANY)],  # never read -> no input DMA
            out_specs=pl.BlockSpec((1, S, L), out_map),
        ),
        # Alias x's buffer onto the output: only masked tiles are (re)written.
        # Call operands are (idx, x3) -> x3 is operand 1.
        input_output_aliases={1: 0},
        compiler_params=pltpu.CompilerParams(
            dimension_semantics=("parallel", "parallel", "arbitrary"),
        ),
    )(idx, x3)
    return out.reshape(N, C, H, W)


# ---------------------------------------------------------------------------
# General path: arbitrary H, W -> full-(H, W) block per masked channel.
# ---------------------------------------------------------------------------
def _zero_mask_scatter_4d(x, idx):
    N, C, H, W = x.shape
    n_masked = idx.shape[0]

    def out_map(n, c, idx_ref):
        return (n, idx_ref[c], 0, 0)

    return pl.pallas_call(
        _scatter_zero_kernel,
        out_shape=jax.ShapeDtypeStruct((N, C, H, W), x.dtype),
        grid_spec=pltpu.PrefetchScalarGridSpec(
            num_scalar_prefetch=1,
            grid=(N, n_masked),
            in_specs=[pl.BlockSpec(memory_space=pl.ANY)],   # never read -> no input DMA
            out_specs=pl.BlockSpec((1, 1, H, W), out_map),  # full (H, W): always legal
        ),
        input_output_aliases={1: 0},
        compiler_params=pltpu.CompilerParams(
            dimension_semantics=("parallel", "parallel"),
        ),
    )(idx, x)


# ---------------------------------------------------------------------------
# Wrapper ("forward").
# ---------------------------------------------------------------------------
def _normalize_mask(mask, C):
    """Static (module-parameter) mask -> sorted unique int32 channel indices.
    NOTE: the mask must be static (numpy-convertible); a traced jnp mask is not
    supported -- it is a module parameter in the PyTorch spec."""
    m = np.asarray(mask)
    if m.size == 0:
        return np.zeros((0,), np.int32)
    if m.dtype == np.bool_:
        if m.shape != (C,):
            raise ValueError(f"boolean mask must have shape ({C},), got {m.shape}")
        idx = np.nonzero(m)[0]
    else:
        idx = m.astype(np.int64).reshape(-1)
        idx = np.where(idx < 0, idx + C, idx)
        if np.any((idx < 0) | (idx >= C)):
            raise IndexError(f"mask index out of range for {C} channels")
    return np.unique(idx).astype(np.int32)


def _zero_mask_impl(x, idx):
    _, _, H, W = x.shape
    if (H * W) % 128 == 0:
        return _zero_mask_scatter_lanes(x, idx)
    return _zero_mask_scatter_4d(x, idx)


# Donate x so input_output_aliases is a true in-place update (PyTorch semantics),
# not a hidden full-tensor copy.
_zero_mask_jit = jax.jit(_zero_mask_impl, donate_argnums=(0,))


def zero_mask(x, mask):
    """Functional equivalent of ZeroMask.forward: returns x with x[:, mask] = 0.
    `x` is donated (consumed); do not reuse it after the call."""
    _, C, _, _ = x.shape
    idx_np = _normalize_mask(mask, C)
    if idx_np.size == 0:
        return x
    return _zero_mask_jit(x, jnp.asarray(idx_np))


if __name__ == "__main__":
    key = jax.random.PRNGKey(0)
    k1, k2 = jax.random.split(key)
    mask = [1, 3]                       # deterministic "module parameter"
    idx = jnp.asarray(np.asarray(mask, np.int32))

    # --- lane-dense fast path (H*W % 128 == 0) ---
    N, C, H, W = 2, 4, 16, 16
    x = jax.random.normal(k1, (N, C, H, W), dtype=jnp.float32)
    ref = jax.block_until_ready(x.at[:, idx].set(0.0))   # reference before x is donated

    y = jax.block_until_ready(zero_mask(x, mask))
    assert y.shape == ref.shape and y.dtype == ref.dtype
    assert bool(jnp.array_equal(y, ref)), "lane path mismatch vs reference"
    assert bool(jnp.all(y[:, idx] == 0.0))

    # --- general path (H*W not a multiple of 128) ---
    H2, W2 = 7, 9
    x2 = jax.random.normal(k2, (N, C, H2, W2), dtype=jnp.float32)
    ref2 = jax.block_until_ready(x2.at[:, idx].set(0.0))

    y2 = jax.block_until_ready(zero_mask(x2, mask))
    assert bool(jnp.array_equal(y2, ref2)), "general path mismatch vs reference"
    assert bool(jnp.all(y2[:, idx] == 0.0))

    print("KERNEL_OK")
</pallas_src>

<mosaic_0001>
module attributes {stable_mosaic.version = 11 : i64} {
  func.func @_scatter_zero_kernel(%arg0: i32, %arg1: i32, %arg2: i32, %arg3: memref<2xi32, #tpu.memory_space<smem>>, %arg4: memref<8x1x256xf32, #tpu.memory_space<any>>, %arg5: memref<1x1x256xf32, #tpu.memory_space<vmem>>) attributes {dimension_semantics = [#tpu.dimension_semantics<parallel>, #tpu.dimension_semantics<parallel>, #tpu.dimension_semantics<arbitrary>], iteration_bounds = array<i64: 2, 2, 1>, scalar_prefetch = 1 : i64, scratch_operands = 0 : i64, tpu.core_type = #tpu.core_type<tc>, window_params = [{}, {transform_indices = @transform_1, window_bounds = array<i64: 1, 1, 256>}]} {
    %cst = arith.constant 0.000000e+00 : f32
    %0 = vector.broadcast %cst : f32 to vector<1x1x256xf32>
    %c0 = arith.constant 0 : index
    %c0_0 = arith.constant 0 : index
    %c0_1 = arith.constant 0 : index
    %1 = vector.load %arg5[%c0, %c0_0, %c0_1] : memref<1x1x256xf32, #tpu.memory_space<vmem>>, vector<1x1x256xf32>
    tpu.vector_store %arg5[%c0, %c0_0, %c0_1], %0 {strides = array<i32>} : memref<1x1x256xf32, #tpu.memory_space<vmem>>, vector<1x1x256xf32>,
    return
  }
  func.func @transform_1(%arg0: i32, %arg1: i32, %arg2: i32, %arg3: memref<2xi32, #tpu.memory_space<smem>>) -> (i32, i32, i32) {
    %c4_i32 = arith.constant 4 : i32
    %0 = arith.muli %arg0, %c4_i32 : i32
    %1 = arith.index_cast %arg1 : i32 to index
    %2 = memref.load %arg3[%1] : memref<2xi32, #tpu.memory_space<smem>>
    %3 = arith.addi %0, %2 : i32
    %c0_i32 = arith.constant 0 : i32
    %c0_i32_0 = arith.constant 0 : i32
    return %3, %arg2, %c0_i32 : i32, i32, i32
  }
}

</mosaic_0001>

<bundles_post_ra>
// kernel: _zero_mask_impl.1
= control target key start
LH: loop header
LB: loop body
LE: loop exit
PB: predicated region body
PF: predicated region fallthrough
CT: control target
= control target key end

     0   :  { %s280_s0 = inlined_call_operand.vmem [shape: s32[2], index: 0, kind: input, shape index: {}]   ;;  %s281_s1 = inlined_call_operand.vmem [shape: f32[8,1,256], index: 1, kind: input, shape index: {}, may-alias: {1,2}]   ;;  %s282_s2 = inlined_call_operand.vmem [shape: f32[8,1,256], index: 2, kind: output, shape index: {}, may-alias: {1,2}]  }
   0x1   :  { %s7_s11 = sshll.u32 %s280_s0, 4  ;;  %s8_s11 = int_to_ptr.vmem [resolvable:$true] %s7_s11 }
   0x2   :  { %s204_s12 = scalar_lea.vmem %s8_s11, 16  ;;  %p209_p1 = scmp.lt.s32.totalorder %s8_s11, %s8_s11 }
   0x3   :  { %p205_p0 = scmp.ne.s32.totalorder %s8_s11, %s204_s12  ;;  %p210_p2 = scmp.lt.s32.totalorder %s204_s12, %s204_s12 }
   0x5   :  { %p211_p3 = por %p210_p2, %p209_p1 }
   0x7   :  { %p212_p4 = pnand %p211_p3, %p205_p0 }
   0x9   :  { %215 = shalt.err (!%p212_p4)  }
   0xa   :  { %s242_s13 = smov [#allocation3]  }
   0xb   :  { %10 = dma.vmem_to_smem %s8_s11, 16, %s242_s13, [#allocation2] }
   0xc   :  { %228 = dma.done.wait [#allocation2], 16 }
   0xd   :  { %229 = vsyncadd [#allocation2], 4294967280 }
   0xe   :  { %12 = sfence }
   0xf   :  { %s262_s1 = smov 0   ;;  %s264_s14 = smov 0  }
  0x10   :  { %s266_s15 = smov 0  }
  0x11 LB: > { %s29_s0 = sadd.s32 1, %s232_s1  ;;  %s33_s16 = sadd.s32 1, %s236_s14  ;;  %s240_s15 = sphi %s266_s15, %s18_s15   ;;  %s236_s14 = sphi %s264_s14, %s284_s14   ;;  %s232_s1 = sphi %s262_s1, %s283_s1  }
  0x12   : > { %p31_p5 = scmp.ge.s32.totalorder %s29_s0, 2  ;;  %p173_p7 = scmp.ge.s32.totalorder %s240_s15, 4 }
  0x13   : > { %s82_s17 = sld [smem:[#allocation3 + %s232_s1]] (!%p173_p7)  ;;  %s174_s18 = sshll.u32 (!%p173_p7), %s236_s14, 2  ;;  %v95_v0 = vlaneseq (!%p173_p7)  ;;  %v243_v1 = vmov (!%p173_p7), 0.0  }
  0x14   : > { %s286_s0 = smov (%p31_p5, %s29_s0), 0  ;;  %s288_s16 = smov (!%p31_p5, %s33_s16), %s236_s14 }
  0x15   : > { %p35_p6 = scmp.ge.s32.totalorder %s288_s16, 2  ;;  %67 = sbr.rel (%p173_p7) target bundleno = 32 (0x20), region = 12  ;;  %vm97_vm0 = vcmp.lt.s32.totalorder (!%p173_p7), %v95_v0, 256 }
  0x17   : > { %s290_s16 = smov (%p35_p6, %s288_s16), 0 }
  0x19   : > { %s83_s19 = sadd.s32 (!%p173_p7), %s174_s18, %s82_s17 }
  0x1a   : > { %p84_p8 = scmp.lt.s32.totalorder (!%p173_p7), %s83_s19, 7 }
  0x1c   : > { %s292_s19 = smov (!%p84_p8, %s83_s19), 7 }
  0x1d   : > { %s175_s20 = sshll.u32 %s292_s19, 1 }
  0x1e   : > { %s91_s23 = scalar_lea.vmem %s282_s2, %s175_s20 }
  0x1f   : > { %99 = vst.msk [vmem:[%s91_s23] sm:$0x3] %vm97_vm0, %v243_v1 }
  0x20 PF: > { %s18_s15 = sadd.s32 1, %s240_s15   ;;  %s283_s1 = smov %s286_s0 }
  0x21   : > { %p15_p9 = scmp.ge.s32.totalorder %s18_s15, 5   ;;  %s284_s14 = smov %s290_s16 }
  0x23   :  { %17 = sbr.rel (!%p15_p9) target bundleno = 17 (0x11), region = 39 }

</bundles_post_ra>
